<compile_context>
chip_gen: v5e
topology: v5e:2x2
jax: 0.10.0
libtpu: 0.0.40
codegen_flags: <defaults>
</compile_context>

<pallas_src>
import jax
import jax.numpy as jnp
from jax import lax
from jax.experimental import pallas as pl
from jax.experimental.pallas import tpu as pltpu


def _neighbour(a2, axis):
    """Adjacent element along `axis` with wrap-around for a 2-D (rows, cols) tile.

    Uses the XLU rotate (pltpu.roll) when the tile is (8, 128)-aligned, else a
    slice+concat fallback that always lowers.  The downstream math only needs
    (i) pred and image shifted identically and (ii) the single wrap-around pair
    being {first, last} along `axis` — both hold for either roll direction, so
    no sign-convention assumption is made.
    """
    rows, cols = a2.shape
    if rows % 8 == 0 and cols % 128 == 0:
        return pltpu.roll(a2, a2.shape[axis] - 1, axis=axis)
    if axis == 1:
        return jnp.concatenate([a2[:, 1:], a2[:, :1]], axis=1)
    return jnp.concatenate([a2[1:, :], a2[:1, :]], axis=0)


def _smoothness_kernel(pred_ref, img_ref, out_ref, carry_p_ref, carry_i_ref):
    i = pl.program_id(1)                       # row-block index (sequential)
    _, n_cp, th, w = pred_ref.shape
    n_c = img_ref.shape[1]
    inv_c = 1.0 / float(n_c)
    f32 = jnp.float32

    pred = pred_ref[0]                         # (Cp, TH, W), input dtype
    img = img_ref[0]                           # (C,  TH, W), input dtype

    # --- edge-aware weights from the image (channel-sum of |grad|, f32 acc) ---
    sad_x = jnp.zeros((th, w), f32)            # sum_c |img - img_next_col|
    sad_y = jnp.zeros((th, w), f32)            # sum_c |img - img_next_row|
    sad_xw = jnp.zeros((th, 1), f32)           # wrap pair {col 0, col W-1}
    sad_yw = jnp.zeros((1, w), f32)            # wrap pair {row 0, row TH-1}
    for c in range(n_c):
        ic = img[c]
        sad_x += jnp.abs(ic - _neighbour(ic, 1)).astype(f32)
        sad_y += jnp.abs(ic - _neighbour(ic, 0)).astype(f32)
        sad_xw += jnp.abs(ic[:, 0:1] - ic[:, w - 1:w]).astype(f32)
        sad_yw += jnp.abs(ic[0:1, :] - ic[th - 1:th, :]).astype(f32)
    wx = jnp.exp(sad_x * (-inv_c))             # (TH, W)   (1/C folded into exp)
    wy = jnp.exp(sad_y * (-inv_c))
    wxw = jnp.exp(sad_xw * (-inv_c))           # (TH, 1)
    wyw = jnp.exp(sad_yw * (-inv_c))           # (1, W)

    # --- weighted |pred grad| partial sums ------------------------------------
    # The wrap shift introduces exactly one invalid pair per row (x) / per
    # column (y); its contribution is recomputed from the first/last column
    # (row) and subtracted — no per-element masks needed.
    sum_x = jnp.zeros((1, 1), f32)
    sum_y = jnp.zeros((1, 1), f32)
    for cp in range(n_cp):
        pc = pred[cp]
        sum_x += jnp.sum(wx * jnp.abs(pc - _neighbour(pc, 1)).astype(f32),
                         keepdims=True)
        sum_y += jnp.sum(wy * jnp.abs(pc - _neighbour(pc, 0)).astype(f32),
                         keepdims=True)
        sum_x -= jnp.sum(wxw * jnp.abs(pc[:, 0:1] - pc[:, w - 1:w]).astype(f32),
                         keepdims=True)
        sum_y -= jnp.sum(wyw * jnp.abs(pc[0:1, :] - pc[th - 1:th, :]).astype(f32),
                         keepdims=True)

    sub = lax.broadcasted_iota(jnp.int32, (8, 128), 0)

    @pl.when(i == 0)
    def _init():
        out_ref[0] = jnp.zeros((8, 128), f32)

    out_ref[0] += jnp.where(sub == 0, sum_x, 0.0) + jnp.where(sub == 1, sum_y, 0.0)

    # --- y-pairs straddling the previous row-block boundary -------------------
    @pl.when(i > 0)
    def _boundary():
        prev_p = carry_p_ref[...]              # (Cp, W): prev block's last row
        prev_i = carry_i_ref[...]              # (C,  W)
        sad_b = jnp.zeros((1, w), f32)
        for c in range(n_c):
            sad_b += jnp.abs(prev_i[c:c + 1, :] - img[c, 0:1, :]).astype(f32)
        wb = jnp.exp(sad_b * (-inv_c))
        bsum = jnp.zeros((1, 1), f32)
        for cp in range(n_cp):
            bsum += jnp.sum(
                wb * jnp.abs(prev_p[cp:cp + 1, :] - pred[cp, 0:1, :]).astype(f32),
                keepdims=True)
        out_ref[0] += jnp.where(sub == 1, bsum, 0.0)

    # --- carry this block's last row to the next row-block --------------------
    carry_p_ref[...] = pred[:, th - 1, :]
    carry_i_ref[...] = img[:, th - 1, :]


def _pick_block_h(H, W, Cp, C, p_isz, i_isz, target_bytes=2 * 1024 * 1024):
    """Largest multiple of 8 that divides H and keeps a block ~target_bytes."""
    per_row = max(1, (Cp * p_isz + C * i_isz) * W)
    th = min(H, max(8, target_bytes // per_row))
    th -= th % 8
    while th >= 8:
        if H % th == 0:
            return int(th)
        th -= 8
    return int(H)    # fallback: whole height (block dim == full array dim)


def smoothness_loss(predict, image, *, block_h=None):
    """predict: (N, Cp, H, W), image: (N, C, H, W) -> scalar f32 loss."""
    N, Cp, H, W = predict.shape
    Ni, C, Hi, Wi = image.shape
    assert (N, H, W) == (Ni, Hi, Wi), "predict/image spatial dims must match"
    # Reference torch.mean over empty gradients would be NaN below these sizes.
    assert H >= 2 and W >= 2, "smoothness_loss requires H >= 2 and W >= 2"

    p_isz = predict.dtype.itemsize
    i_isz = image.dtype.itemsize
    if block_h is None:
        block_h = _pick_block_h(H, W, Cp, C, p_isz, i_isz)
    assert 0 < block_h <= H and H % block_h == 0
    assert block_h == H or block_h % 8 == 0
    n_h = H // block_h

    blk_bytes = (Cp * p_isz + C * i_isz) * block_h * W
    vmem_limit = int(min(64 * 2**20, max(32 * 2**20, 8 * blk_bytes)))

    partials = pl.pallas_call(
        _smoothness_kernel,
        out_shape=jax.ShapeDtypeStruct((N, 8, 128), jnp.float32),
        grid=(N, n_h),
        in_specs=[
            pl.BlockSpec((1, Cp, block_h, W), lambda n, i: (n, 0, i, 0)),
            pl.BlockSpec((1, C, block_h, W), lambda n, i: (n, 0, i, 0)),
        ],
        out_specs=pl.BlockSpec((1, 8, 128), lambda n, i: (n, 0, 0)),
        scratch_shapes=[
            pltpu.VMEM((Cp, W), predict.dtype),   # prev block's last pred row
            pltpu.VMEM((C, W), image.dtype),      # prev block's last image row
        ],
        compiler_params=pltpu.CompilerParams(
            dimension_semantics=("parallel", "arbitrary"),
            vmem_limit_bytes=vmem_limit,
        ),
    )(predict, image)

    # Tiny epilogue: reduce per-batch partials and divide once by the two
    # (different) global element counts.
    sum_x = jnp.sum(partials[:, 0, 0])
    sum_y = jnp.sum(partials[:, 1, 0])
    inv_cx = 1.0 / float(N * Cp * H * (W - 1))
    inv_cy = 1.0 / float(N * Cp * (H - 1) * W)
    return sum_x * inv_cx + sum_y * inv_cy


def smoothness_loss_ref(predict, image):
    """Pure-JAX reference (mirrors the PyTorch module exactly)."""
    pdx = predict[:, :, :, :-1] - predict[:, :, :, 1:]
    pdy = predict[:, :, :-1, :] - predict[:, :, 1:, :]
    idx = image[:, :, :, :-1] - image[:, :, :, 1:]
    idy = image[:, :, :-1, :] - image[:, :, 1:, :]
    wx = jnp.exp(-jnp.mean(jnp.abs(idx), axis=1, keepdims=True))
    wy = jnp.exp(-jnp.mean(jnp.abs(idy), axis=1, keepdims=True))
    sx = jnp.mean(wx * jnp.abs(pdx))
    sy = jnp.mean(wy * jnp.abs(pdy))
    return sx + sy


if __name__ == "__main__":
    key = jax.random.PRNGKey(0)
    k1, k2 = jax.random.split(key)

    N, Cp, C, H, W = 2, 1, 3, 16, 16
    predict = jax.random.normal(k1, (N, Cp, H, W), dtype=jnp.float32)  # depth map
    image = jax.random.uniform(k2, (N, C, H, W), dtype=jnp.float32)    # RGB image

    ref = jax.block_until_ready(smoothness_loss_ref(predict, image))

    # Default tiling (whole-height row blocks for this small image).
    loss = jax.block_until_ready(smoothness_loss(predict, image))
    assert jnp.allclose(loss, ref, rtol=1e-5, atol=1e-5), (loss, ref)

    # Forced row-block tiling (block_h=8 -> 2 row blocks per batch), which
    # exercises the cross-block boundary carry path.
    loss_t = jax.block_until_ready(smoothness_loss(predict, image, block_h=8))
    assert jnp.allclose(loss_t, ref, rtol=1e-5, atol=1e-5), (loss_t, ref)

    print("KERNEL_OK")
</pallas_src>

<mosaic_0001>
module attributes {stable_mosaic.version = 11 : i64} {
  func.func @_smoothness_kernel(%arg0: i32, %arg1: i32, %arg2: memref<1x1x16x16xf32, #tpu.memory_space<vmem>>, %arg3: memref<1x3x16x16xf32, #tpu.memory_space<vmem>>, %arg4: memref<1x8x128xf32, #tpu.memory_space<vmem>>, %arg5: memref<1x16xf32, #tpu.memory_space<vmem>>, %arg6: memref<3x16xf32, #tpu.memory_space<vmem>>) attributes {dimension_semantics = [#tpu.dimension_semantics<parallel>, #tpu.dimension_semantics<arbitrary>], iteration_bounds = array<i64: 2, 1>, scalar_prefetch = 0 : i64, scratch_operands = 2 : i64, tpu.core_type = #tpu.core_type<tc>, window_params = [{transform_indices = @transform_0, window_bounds = array<i64: 1, 1, 16, 16>}, {transform_indices = @transform_1, window_bounds = array<i64: 1, 3, 16, 16>}, {transform_indices = @transform_2, window_bounds = array<i64: 1, 8, 128>}]} {
    %c0 = arith.constant 0 : index
    %c0_0 = arith.constant 0 : index
    %c0_1 = arith.constant 0 : index
    %c0_2 = arith.constant 0 : index
    %0 = vector.load %arg2[%c0, %c0_0, %c0_1, %c0_2] : memref<1x1x16x16xf32, #tpu.memory_space<vmem>>, vector<1x1x16x16xf32>
    %1 = vector.shape_cast %0 : vector<1x1x16x16xf32> to vector<1x16x16xf32>
    %c0_3 = arith.constant 0 : index
    %c0_4 = arith.constant 0 : index
    %c0_5 = arith.constant 0 : index
    %c0_6 = arith.constant 0 : index
    %2 = vector.load %arg3[%c0_3, %c0_4, %c0_5, %c0_6] : memref<1x3x16x16xf32, #tpu.memory_space<vmem>>, vector<1x3x16x16xf32>
    %3 = vector.shape_cast %2 : vector<1x3x16x16xf32> to vector<3x16x16xf32>
    %cst = arith.constant 0.000000e+00 : f32
    %4 = vector.broadcast %cst : f32 to vector<16x16xf32>
    %cst_7 = arith.constant 0.000000e+00 : f32
    %5 = vector.broadcast %cst_7 : f32 to vector<16x16xf32>
    %cst_8 = arith.constant 0.000000e+00 : f32
    %6 = vector.broadcast %cst_8 : f32 to vector<16x1xf32>
    %cst_9 = arith.constant 0.000000e+00 : f32
    %7 = vector.broadcast %cst_9 : f32 to vector<1x16xf32>
    %8 = vector.extract_strided_slice %3 {offsets = [0, 0, 0], sizes = [1, 16, 16], strides = [1, 1, 1]} : vector<3x16x16xf32> to vector<1x16x16xf32>
    %9 = vector.shape_cast %8 : vector<1x16x16xf32> to vector<16x16xf32>
    %10 = vector.extract_strided_slice %9 {offsets = [0, 1], sizes = [16, 15], strides = [1, 1]} : vector<16x16xf32> to vector<16x15xf32>
    %11 = vector.extract_strided_slice %9 {offsets = [0, 0], sizes = [16, 1], strides = [1, 1]} : vector<16x16xf32> to vector<16x1xf32>
    %12 = tpu.concatenate %10, %11 in 1 : vector<16x15xf32>, vector<16x1xf32> -> vector<16x16xf32>
    %13 = arith.subf %9, %12 : vector<16x16xf32>
    %14 = math.absf %13 : vector<16x16xf32>
    %15 = arith.addf %4, %14 : vector<16x16xf32>
    %16 = vector.extract_strided_slice %9 {offsets = [1, 0], sizes = [15, 16], strides = [1, 1]} : vector<16x16xf32> to vector<15x16xf32>
    %17 = vector.extract_strided_slice %9 {offsets = [0, 0], sizes = [1, 16], strides = [1, 1]} : vector<16x16xf32> to vector<1x16xf32>
    %18 = tpu.concatenate %16, %17 in 0 : vector<15x16xf32>, vector<1x16xf32> -> vector<16x16xf32>
    %19 = arith.subf %9, %18 : vector<16x16xf32>
    %20 = math.absf %19 : vector<16x16xf32>
    %21 = arith.addf %5, %20 : vector<16x16xf32>
    %22 = vector.extract_strided_slice %9 {offsets = [0, 0], sizes = [16, 1], strides = [1, 1]} : vector<16x16xf32> to vector<16x1xf32>
    %23 = vector.extract_strided_slice %9 {offsets = [0, 15], sizes = [16, 1], strides = [1, 1]} : vector<16x16xf32> to vector<16x1xf32>
    %24 = arith.subf %22, %23 : vector<16x1xf32>
    %25 = math.absf %24 : vector<16x1xf32>
    %26 = arith.addf %6, %25 : vector<16x1xf32>
    %27 = vector.extract_strided_slice %9 {offsets = [0, 0], sizes = [1, 16], strides = [1, 1]} : vector<16x16xf32> to vector<1x16xf32>
    %28 = vector.extract_strided_slice %9 {offsets = [15, 0], sizes = [1, 16], strides = [1, 1]} : vector<16x16xf32> to vector<1x16xf32>
    %29 = arith.subf %27, %28 : vector<1x16xf32>
    %30 = math.absf %29 : vector<1x16xf32>
    %31 = arith.addf %7, %30 : vector<1x16xf32>
    %32 = vector.extract_strided_slice %3 {offsets = [1, 0, 0], sizes = [1, 16, 16], strides = [1, 1, 1]} : vector<3x16x16xf32> to vector<1x16x16xf32>
    %33 = vector.shape_cast %32 : vector<1x16x16xf32> to vector<16x16xf32>
    %34 = vector.extract_strided_slice %33 {offsets = [0, 1], sizes = [16, 15], strides = [1, 1]} : vector<16x16xf32> to vector<16x15xf32>
    %35 = vector.extract_strided_slice %33 {offsets = [0, 0], sizes = [16, 1], strides = [1, 1]} : vector<16x16xf32> to vector<16x1xf32>
    %36 = tpu.concatenate %34, %35 in 1 : vector<16x15xf32>, vector<16x1xf32> -> vector<16x16xf32>
    %37 = arith.subf %33, %36 : vector<16x16xf32>
    %38 = math.absf %37 : vector<16x16xf32>
    %39 = arith.addf %15, %38 : vector<16x16xf32>
    %40 = vector.extract_strided_slice %33 {offsets = [1, 0], sizes = [15, 16], strides = [1, 1]} : vector<16x16xf32> to vector<15x16xf32>
    %41 = vector.extract_strided_slice %33 {offsets = [0, 0], sizes = [1, 16], strides = [1, 1]} : vector<16x16xf32> to vector<1x16xf32>
    %42 = tpu.concatenate %40, %41 in 0 : vector<15x16xf32>, vector<1x16xf32> -> vector<16x16xf32>
    %43 = arith.subf %33, %42 : vector<16x16xf32>
    %44 = math.absf %43 : vector<16x16xf32>
    %45 = arith.addf %21, %44 : vector<16x16xf32>
    %46 = vector.extract_strided_slice %33 {offsets = [0, 0], sizes = [16, 1], strides = [1, 1]} : vector<16x16xf32> to vector<16x1xf32>
    %47 = vector.extract_strided_slice %33 {offsets = [0, 15], sizes = [16, 1], strides = [1, 1]} : vector<16x16xf32> to vector<16x1xf32>
    %48 = arith.subf %46, %47 : vector<16x1xf32>
    %49 = math.absf %48 : vector<16x1xf32>
    %50 = arith.addf %26, %49 : vector<16x1xf32>
    %51 = vector.extract_strided_slice %33 {offsets = [0, 0], sizes = [1, 16], strides = [1, 1]} : vector<16x16xf32> to vector<1x16xf32>
    %52 = vector.extract_strided_slice %33 {offsets = [15, 0], sizes = [1, 16], strides = [1, 1]} : vector<16x16xf32> to vector<1x16xf32>
    %53 = arith.subf %51, %52 : vector<1x16xf32>
    %54 = math.absf %53 : vector<1x16xf32>
    %55 = arith.addf %31, %54 : vector<1x16xf32>
    %56 = vector.extract_strided_slice %3 {offsets = [2, 0, 0], sizes = [1, 16, 16], strides = [1, 1, 1]} : vector<3x16x16xf32> to vector<1x16x16xf32>
    %57 = vector.shape_cast %56 : vector<1x16x16xf32> to vector<16x16xf32>
    %58 = vector.extract_strided_slice %57 {offsets = [0, 1], sizes = [16, 15], strides = [1, 1]} : vector<16x16xf32> to vector<16x15xf32>
    %59 = vector.extract_strided_slice %57 {offsets = [0, 0], sizes = [16, 1], strides = [1, 1]} : vector<16x16xf32> to vector<16x1xf32>
    %60 = tpu.concatenate %58, %59 in 1 : vector<16x15xf32>, vector<16x1xf32> -> vector<16x16xf32>
    %61 = arith.subf %57, %60 : vector<16x16xf32>
    %62 = math.absf %61 : vector<16x16xf32>
    %63 = arith.addf %39, %62 : vector<16x16xf32>
    %64 = vector.extract_strided_slice %57 {offsets = [1, 0], sizes = [15, 16], strides = [1, 1]} : vector<16x16xf32> to vector<15x16xf32>
    %65 = vector.extract_strided_slice %57 {offsets = [0, 0], sizes = [1, 16], strides = [1, 1]} : vector<16x16xf32> to vector<1x16xf32>
    %66 = tpu.concatenate %64, %65 in 0 : vector<15x16xf32>, vector<1x16xf32> -> vector<16x16xf32>
    %67 = arith.subf %57, %66 : vector<16x16xf32>
    %68 = math.absf %67 : vector<16x16xf32>
    %69 = arith.addf %45, %68 : vector<16x16xf32>
    %70 = vector.extract_strided_slice %57 {offsets = [0, 0], sizes = [16, 1], strides = [1, 1]} : vector<16x16xf32> to vector<16x1xf32>
    %71 = vector.extract_strided_slice %57 {offsets = [0, 15], sizes = [16, 1], strides = [1, 1]} : vector<16x16xf32> to vector<16x1xf32>
    %72 = arith.subf %70, %71 : vector<16x1xf32>
    %73 = math.absf %72 : vector<16x1xf32>
    %74 = arith.addf %50, %73 : vector<16x1xf32>
    %75 = vector.extract_strided_slice %57 {offsets = [0, 0], sizes = [1, 16], strides = [1, 1]} : vector<16x16xf32> to vector<1x16xf32>
    %76 = vector.extract_strided_slice %57 {offsets = [15, 0], sizes = [1, 16], strides = [1, 1]} : vector<16x16xf32> to vector<1x16xf32>
    %77 = arith.subf %75, %76 : vector<1x16xf32>
    %78 = math.absf %77 : vector<1x16xf32>
    %79 = arith.addf %55, %78 : vector<1x16xf32>
    %cst_10 = arith.constant -0.333333343 : f32
    %80 = vector.broadcast %cst_10 : f32 to vector<16x16xf32>
    %81 = arith.mulf %63, %80 : vector<16x16xf32>
    %82 = math.exp %81 : vector<16x16xf32>
    %cst_11 = arith.constant -0.333333343 : f32
    %83 = vector.broadcast %cst_11 : f32 to vector<16x16xf32>
    %84 = arith.mulf %69, %83 : vector<16x16xf32>
    %85 = math.exp %84 : vector<16x16xf32>
    %cst_12 = arith.constant -0.333333343 : f32
    %86 = vector.broadcast %cst_12 : f32 to vector<16x1xf32>
    %87 = arith.mulf %74, %86 : vector<16x1xf32>
    %88 = math.exp %87 : vector<16x1xf32>
    %cst_13 = arith.constant -0.333333343 : f32
    %89 = vector.broadcast %cst_13 : f32 to vector<1x16xf32>
    %90 = arith.mulf %79, %89 : vector<1x16xf32>
    %91 = math.exp %90 : vector<1x16xf32>
    %cst_14 = arith.constant 0.000000e+00 : f32
    %92 = vector.broadcast %cst_14 : f32 to vector<1x1xf32>
    %cst_15 = arith.constant 0.000000e+00 : f32
    %93 = vector.broadcast %cst_15 : f32 to vector<1x1xf32>
    %94 = vector.shape_cast %1 : vector<1x16x16xf32> to vector<16x16xf32>
    %95 = vector.extract_strided_slice %94 {offsets = [0, 1], sizes = [16, 15], strides = [1, 1]} : vector<16x16xf32> to vector<16x15xf32>
    %96 = vector.extract_strided_slice %94 {offsets = [0, 0], sizes = [16, 1], strides = [1, 1]} : vector<16x16xf32> to vector<16x1xf32>
    %97 = tpu.concatenate %95, %96 in 1 : vector<16x15xf32>, vector<16x1xf32> -> vector<16x16xf32>
    %98 = arith.subf %94, %97 : vector<16x16xf32>
    %99 = math.absf %98 : vector<16x16xf32>
    %100 = arith.mulf %82, %99 : vector<16x16xf32>
    %101 = vector.shape_cast %100 : vector<16x16xf32> to vector<1x16x16xf32>
    %cst_16 = arith.constant dense<0.000000e+00> : vector<1xf32>
    %102 = vector.multi_reduction <add>, %101, %cst_16 [1, 2] : vector<1x16x16xf32> to vector<1xf32>
    %103 = vector.shape_cast %102 : vector<1xf32> to vector<1x1x1xf32>
    %104 = vector.extract %103[0, 0, 0] : f32 from vector<1x1x1xf32>
    %105 = vector.broadcast %104 : f32 to vector<1x1xf32>
    %106 = arith.addf %92, %105 : vector<1x1xf32>
    %107 = vector.extract_strided_slice %94 {offsets = [1, 0], sizes = [15, 16], strides = [1, 1]} : vector<16x16xf32> to vector<15x16xf32>
    %108 = vector.extract_strided_slice %94 {offsets = [0, 0], sizes = [1, 16], strides = [1, 1]} : vector<16x16xf32> to vector<1x16xf32>
    %109 = tpu.concatenate %107, %108 in 0 : vector<15x16xf32>, vector<1x16xf32> -> vector<16x16xf32>
    %110 = arith.subf %94, %109 : vector<16x16xf32>
    %111 = math.absf %110 : vector<16x16xf32>
    %112 = arith.mulf %85, %111 : vector<16x16xf32>
    %113 = vector.shape_cast %112 : vector<16x16xf32> to vector<1x16x16xf32>
    %cst_17 = arith.constant dense<0.000000e+00> : vector<1xf32>
    %114 = vector.multi_reduction <add>, %113, %cst_17 [1, 2] : vector<1x16x16xf32> to vector<1xf32>
    %115 = vector.shape_cast %114 : vector<1xf32> to vector<1x1x1xf32>
    %116 = vector.extract %115[0, 0, 0] : f32 from vector<1x1x1xf32>
    %117 = vector.broadcast %116 : f32 to vector<1x1xf32>
    %118 = arith.addf %93, %117 : vector<1x1xf32>
    %119 = vector.extract_strided_slice %94 {offsets = [0, 0], sizes = [16, 1], strides = [1, 1]} : vector<16x16xf32> to vector<16x1xf32>
    %120 = vector.extract_strided_slice %94 {offsets = [0, 15], sizes = [16, 1], strides = [1, 1]} : vector<16x16xf32> to vector<16x1xf32>
    %121 = arith.subf %119, %120 : vector<16x1xf32>
    %122 = math.absf %121 : vector<16x1xf32>
    %123 = arith.mulf %88, %122 : vector<16x1xf32>
    %124 = vector.shape_cast %123 : vector<16x1xf32> to vector<1x16x1xf32>
    %cst_18 = arith.constant dense<0.000000e+00> : vector<1xf32>
    %125 = vector.multi_reduction <add>, %124, %cst_18 [1, 2] : vector<1x16x1xf32> to vector<1xf32>
    %126 = vector.shape_cast %125 : vector<1xf32> to vector<1x1x1xf32>
    %127 = vector.extract %126[0, 0, 0] : f32 from vector<1x1x1xf32>
    %128 = vector.broadcast %127 : f32 to vector<1x1xf32>
    %129 = arith.subf %106, %128 : vector<1x1xf32>
    %130 = vector.extract_strided_slice %94 {offsets = [0, 0], sizes = [1, 16], strides = [1, 1]} : vector<16x16xf32> to vector<1x16xf32>
    %131 = vector.extract_strided_slice %94 {offsets = [15, 0], sizes = [1, 16], strides = [1, 1]} : vector<16x16xf32> to vector<1x16xf32>
    %132 = arith.subf %130, %131 : vector<1x16xf32>
    %133 = math.absf %132 : vector<1x16xf32>
    %134 = arith.mulf %91, %133 : vector<1x16xf32>
    %135 = vector.shape_cast %134 : vector<1x16xf32> to vector<1x1x16xf32>
    %cst_19 = arith.constant dense<0.000000e+00> : vector<1xf32>
    %136 = vector.multi_reduction <add>, %135, %cst_19 [1, 2] : vector<1x1x16xf32> to vector<1xf32>
    %137 = vector.shape_cast %136 : vector<1xf32> to vector<1x1x1xf32>
    %138 = vector.extract %137[0, 0, 0] : f32 from vector<1x1x1xf32>
    %139 = vector.broadcast %138 : f32 to vector<1x1xf32>
    %140 = arith.subf %118, %139 : vector<1x1xf32>
    %141 = tpu.iota {dimensions = array<i32: 0>} : vector<8x128xi32>
    %c0_i32 = arith.constant 0 : i32
    %142 = arith.cmpi eq, %arg1, %c0_i32 : i32
    %143 = arith.extui %142 : i1 to i32
    %c0_i32_20 = arith.constant 0 : i32
    %144 = arith.cmpi ne, %143, %c0_i32_20 : i32
    scf.if %144 {
      %cst_36 = arith.constant 0.000000e+00 : f32
      %173 = vector.broadcast %cst_36 : f32 to vector<8x128xf32>
      %c0_37 = arith.constant 0 : index
      %c0_38 = arith.constant 0 : index
      %c0_39 = arith.constant 0 : index
      %174 = vector.load %arg4[%c0_37, %c0_38, %c0_39] : memref<1x8x128xf32, #tpu.memory_space<vmem>>, vector<1x8x128xf32>
      %175 = vector.shape_cast %174 : vector<1x8x128xf32> to vector<8x128xf32>
      %176 = vector.shape_cast %173 : vector<8x128xf32> to vector<1x8x128xf32>
      tpu.vector_store %arg4[%c0_37, %c0_38, %c0_39], %176 {strides = array<i32>} : memref<1x8x128xf32, #tpu.memory_space<vmem>>, vector<1x8x128xf32>,
    } else {
    }
    %c0_21 = arith.constant 0 : index
    %c0_22 = arith.constant 0 : index
    %c0_23 = arith.constant 0 : index
    %145 = vector.load %arg4[%c0_21, %c0_22, %c0_23] : memref<1x8x128xf32, #tpu.memory_space<vmem>>, vector<1x8x128xf32>
    %146 = vector.shape_cast %145 : vector<1x8x128xf32> to vector<8x128xf32>
    %c0_i32_24 = arith.constant 0 : i32
    %147 = vector.broadcast %c0_i32_24 : i32 to vector<8x128xi32>
    %148 = arith.cmpi eq, %141, %147 : vector<8x128xi32>
    %cst_25 = arith.constant 0.000000e+00 : f32
    %149 = vector.shape_cast %129 : vector<1x1xf32> to vector<1x1xf32>
    %150 = vector.broadcast %149 : vector<1x1xf32> to vector<8x128xf32>
    %151 = vector.broadcast %cst_25 : f32 to vector<8x128xf32>
    %152 = arith.select %148, %150, %151 : vector<8x128xi1>, vector<8x128xf32>
    %c1_i32 = arith.constant 1 : i32
    %153 = vector.broadcast %c1_i32 : i32 to vector<8x128xi32>
    %154 = arith.cmpi eq, %141, %153 : vector<8x128xi32>
    %cst_26 = arith.constant 0.000000e+00 : f32
    %155 = vector.shape_cast %140 : vector<1x1xf32> to vector<1x1xf32>
    %156 = vector.broadcast %155 : vector<1x1xf32> to vector<8x128xf32>
    %157 = vector.broadcast %cst_26 : f32 to vector<8x128xf32>
    %158 = arith.select %154, %156, %157 : vector<8x128xi1>, vector<8x128xf32>
    %159 = arith.addf %152, %158 : vector<8x128xf32>
    %160 = arith.addf %146, %159 : vector<8x128xf32>
    %c0_27 = arith.constant 0 : index
    %c0_28 = arith.constant 0 : index
    %c0_29 = arith.constant 0 : index
    %161 = vector.load %arg4[%c0_27, %c0_28, %c0_29] : memref<1x8x128xf32, #tpu.memory_space<vmem>>, vector<1x8x128xf32>
    %162 = vector.shape_cast %161 : vector<1x8x128xf32> to vector<8x128xf32>
    %163 = vector.shape_cast %160 : vector<8x128xf32> to vector<1x8x128xf32>
    tpu.vector_store %arg4[%c0_27, %c0_28, %c0_29], %163 {strides = array<i32>} : memref<1x8x128xf32, #tpu.memory_space<vmem>>, vector<1x8x128xf32>,
    %c0_i32_30 = arith.constant 0 : i32
    %164 = arith.cmpi sgt, %arg1, %c0_i32_30 : i32
    %165 = arith.extui %164 : i1 to i32
    %c0_i32_31 = arith.constant 0 : i32
    %166 = arith.cmpi ne, %165, %c0_i32_31 : i32
    scf.if %166 {
      %c0_36 = arith.constant 0 : index
      %c0_37 = arith.constant 0 : index
      %173 = vector.load %arg5[%c0_36, %c0_37] : memref<1x16xf32, #tpu.memory_space<vmem>>, vector<1x16xf32>
      %c0_38 = arith.constant 0 : index
      %c0_39 = arith.constant 0 : index
      %174 = vector.load %arg6[%c0_38, %c0_39] : memref<3x16xf32, #tpu.memory_space<vmem>>, vector<3x16xf32>
      %cst_40 = arith.constant 0.000000e+00 : f32
      %175 = vector.broadcast %cst_40 : f32 to vector<1x16xf32>
      %176 = vector.extract_strided_slice %174 {offsets = [0, 0], sizes = [1, 16], strides = [1, 1]} : vector<3x16xf32> to vector<1x16xf32>
      %177 = vector.extract_strided_slice %3 {offsets = [0, 0, 0], sizes = [1, 1, 16], strides = [1, 1, 1]} : vector<3x16x16xf32> to vector<1x1x16xf32>
      %178 = vector.shape_cast %177 : vector<1x1x16xf32> to vector<1x16xf32>
      %179 = arith.subf %176, %178 : vector<1x16xf32>
      %180 = math.absf %179 : vector<1x16xf32>
      %181 = arith.addf %175, %180 : vector<1x16xf32>
      %182 = vector.extract_strided_slice %174 {offsets = [1, 0], sizes = [1, 16], strides = [1, 1]} : vector<3x16xf32> to vector<1x16xf32>
      %183 = vector.extract_strided_slice %3 {offsets = [1, 0, 0], sizes = [1, 1, 16], strides = [1, 1, 1]} : vector<3x16x16xf32> to vector<1x1x16xf32>
      %184 = vector.shape_cast %183 : vector<1x1x16xf32> to vector<1x16xf32>
      %185 = arith.subf %182, %184 : vector<1x16xf32>
      %186 = math.absf %185 : vector<1x16xf32>
      %187 = arith.addf %181, %186 : vector<1x16xf32>
      %188 = vector.extract_strided_slice %174 {offsets = [2, 0], sizes = [1, 16], strides = [1, 1]} : vector<3x16xf32> to vector<1x16xf32>
      %189 = vector.extract_strided_slice %3 {offsets = [2, 0, 0], sizes = [1, 1, 16], strides = [1, 1, 1]} : vector<3x16x16xf32> to vector<1x1x16xf32>
      %190 = vector.shape_cast %189 : vector<1x1x16xf32> to vector<1x16xf32>
      %191 = arith.subf %188, %190 : vector<1x16xf32>
      %192 = math.absf %191 : vector<1x16xf32>
      %193 = arith.addf %187, %192 : vector<1x16xf32>
      %cst_41 = arith.constant -0.333333343 : f32
      %194 = vector.broadcast %cst_41 : f32 to vector<1x16xf32>
      %195 = arith.mulf %193, %194 : vector<1x16xf32>
      %196 = math.exp %195 : vector<1x16xf32>
      %cst_42 = arith.constant 0.000000e+00 : f32
      %197 = vector.broadcast %cst_42 : f32 to vector<1x1xf32>
      %198 = vector.extract_strided_slice %1 {offsets = [0, 0, 0], sizes = [1, 1, 16], strides = [1, 1, 1]} : vector<1x16x16xf32> to vector<1x1x16xf32>
      %199 = vector.shape_cast %198 : vector<1x1x16xf32> to vector<1x16xf32>
      %200 = arith.subf %173, %199 : vector<1x16xf32>
      %201 = math.absf %200 : vector<1x16xf32>
      %202 = arith.mulf %196, %201 : vector<1x16xf32>
      %203 = vector.shape_cast %202 : vector<1x16xf32> to vector<1x1x16xf32>
      %cst_43 = arith.constant dense<0.000000e+00> : vector<1xf32>
      %204 = vector.multi_reduction <add>, %203, %cst_43 [1, 2] : vector<1x1x16xf32> to vector<1xf32>
      %205 = vector.shape_cast %204 : vector<1xf32> to vector<1x1x1xf32>
      %206 = vector.extract %205[0, 0, 0] : f32 from vector<1x1x1xf32>
      %207 = vector.broadcast %206 : f32 to vector<1x1xf32>
      %208 = arith.addf %197, %207 : vector<1x1xf32>
      %c0_44 = arith.constant 0 : index
      %c0_45 = arith.constant 0 : index
      %c0_46 = arith.constant 0 : index
      %209 = vector.load %arg4[%c0_44, %c0_45, %c0_46] : memref<1x8x128xf32, #tpu.memory_space<vmem>>, vector<1x8x128xf32>
      %210 = vector.shape_cast %209 : vector<1x8x128xf32> to vector<8x128xf32>
      %c1_i32_47 = arith.constant 1 : i32
      %211 = vector.broadcast %c1_i32_47 : i32 to vector<8x128xi32>
      %212 = arith.cmpi eq, %141, %211 : vector<8x128xi32>
      %cst_48 = arith.constant 0.000000e+00 : f32
      %213 = vector.shape_cast %208 : vector<1x1xf32> to vector<1x1xf32>
      %214 = vector.broadcast %213 : vector<1x1xf32> to vector<8x128xf32>
      %215 = vector.broadcast %cst_48 : f32 to vector<8x128xf32>
      %216 = arith.select %212, %214, %215 : vector<8x128xi1>, vector<8x128xf32>
      %217 = arith.addf %210, %216 : vector<8x128xf32>
      %c0_49 = arith.constant 0 : index
      %c0_50 = arith.constant 0 : index
      %c0_51 = arith.constant 0 : index
      %218 = vector.load %arg4[%c0_49, %c0_50, %c0_51] : memref<1x8x128xf32, #tpu.memory_space<vmem>>, vector<1x8x128xf32>
      %219 = vector.shape_cast %218 : vector<1x8x128xf32> to vector<8x128xf32>
      %220 = vector.shape_cast %217 : vector<8x128xf32> to vector<1x8x128xf32>
      tpu.vector_store %arg4[%c0_49, %c0_50, %c0_51], %220 {strides = array<i32>} : memref<1x8x128xf32, #tpu.memory_space<vmem>>, vector<1x8x128xf32>,
    } else {
    }
    %167 = vector.extract_strided_slice %1 {offsets = [0, 15, 0], sizes = [1, 1, 16], strides = [1, 1, 1]} : vector<1x16x16xf32> to vector<1x1x16xf32>
    %168 = vector.shape_cast %167 : vector<1x1x16xf32> to vector<1x16xf32>
    %c0_32 = arith.constant 0 : index
    %c0_33 = arith.constant 0 : index
    %169 = vector.load %arg5[%c0_32, %c0_33] : memref<1x16xf32, #tpu.memory_space<vmem>>, vector<1x16xf32>
    tpu.vector_store %arg5[%c0_32, %c0_33], %168 {strides = array<i32>} : memref<1x16xf32, #tpu.memory_space<vmem>>, vector<1x16xf32>,
    %170 = vector.extract_strided_slice %3 {offsets = [0, 15, 0], sizes = [3, 1, 16], strides = [1, 1, 1]} : vector<3x16x16xf32> to vector<3x1x16xf32>
    %171 = vector.shape_cast %170 : vector<3x1x16xf32> to vector<3x16xf32>
    %c0_34 = arith.constant 0 : index
    %c0_35 = arith.constant 0 : index
    %172 = vector.load %arg6[%c0_34, %c0_35] : memref<3x16xf32, #tpu.memory_space<vmem>>, vector<3x16xf32>
    tpu.vector_store %arg6[%c0_34, %c0_35], %171 {strides = array<i32>} : memref<3x16xf32, #tpu.memory_space<vmem>>, vector<3x16xf32>,
    return
  }
  func.func @transform_0(%arg0: i32, %arg1: i32) -> (i32, i32, i32, i32) {
    %c0_i32 = arith.constant 0 : i32
    %c0_i32_0 = arith.constant 0 : i32
    %c0_i32_1 = arith.constant 0 : i32
    return %arg0, %c0_i32, %arg1, %c0_i32_0 : i32, i32, i32, i32
  }
  func.func @transform_1(%arg0: i32, %arg1: i32) -> (i32, i32, i32, i32) {
    %c0_i32 = arith.constant 0 : i32
    %c0_i32_0 = arith.constant 0 : i32
    %c0_i32_1 = arith.constant 0 : i32
    return %arg0, %c0_i32, %arg1, %c0_i32_0 : i32, i32, i32, i32
  }
  func.func @transform_2(%arg0: i32, %arg1: i32) -> (i32, i32, i32) {
    %c0_i32 = arith.constant 0 : i32
    %c0_i32_0 = arith.constant 0 : i32
    %c0_i32_1 = arith.constant 0 : i32
    return %arg0, %c0_i32, %c0_i32_0 : i32, i32, i32
  }
}

</mosaic_0001>

<bundles_post_ra>
// kernel: tpu_custom_call.1
= control target key start
LH: loop header
LB: loop body
LE: loop exit
PB: predicated region body
PF: predicated region fallthrough
CT: control target
= control target key end

     0   :  { %7 = vsyncpa [#allocation5], 0  ;;  %s1270_s0 = inlined_call_operand.hbm [shape: f32[2,1,16,16], index: 0, kind: input, shape index: {}]   ;;  %s1271_s1 = inlined_call_operand.hbm [shape: f32[2,3,16,16], index: 1, kind: input, shape index: {}]   ;;  %s1272_s2 = inlined_call_operand.hbm [shape: f32[2,8,128], index: 2, kind: output, shape index: {}]  }
   0x1   :  { %9 = vsyncpa [#allocation5 + $0x1], 0 }
   0x2   :  { %10 = vsyncpa [#allocation8], 0 }
   0x3   :  { %12 = vsyncpa [#allocation8 + $0x1], 0 }
   0x4   :  { %13 = vsyncpa [#allocation6], 0 }
   0x5   :  { %15 = vsyncpa [#allocation6 + $0x1], 0  ;;  %s1001_s9 = smov 0   ;;  %s1003_s10 = smov 0  }
   0x6   :  { %s1005_s11 = smov 0   ;;  %s1007_s12 = smov 0  }
   0x7   :  { %s1009_s13 = smov 0   ;;  %s1011_s14 = smov 0  }
   0x8 LB: > { %s719_s15 = sadd.s32 4294967295, %s979_s14   ;;  %s720_s16 = sadd.s32 4294967294, %s979_s14   ;;  %s979_s14 = sphi %s1011_s14, %s21_s14   ;;  %s975_s13 = sphi %s1009_s13, %s1282_s13   ;;  %s971_s12 = sphi %s1007_s12, %s1281_s12   ;;  %s967_s11 = sphi %s1005_s11, %s1280_s11   ;;  %s963_s10 = sphi %s1003_s10, %s1279_s10   ;;  %s959_s9 = sphi %s1001_s9, %s1278_s9  }
   0x9   : > { %s33_s17 = sadd.s32 1, %s975_s13  ;;  %s42_s18 = sadd.s32 1, %s967_s11 }
   0xa   : > { %p35_p0 = scmp.ge.s32.totalorder %s33_s17, 2  ;;  %p49_p1 = scmp.ne.s32.totalorder %s967_s11, %s963_s10 }
   0xb   : > { %p50_p2 = scmp.eq.s32.totalorder %s979_s14, 0  ;;  %p55_p3 = scmp.ne.s32.totalorder %s963_s10, %s959_s9 }
   0xc   : > { %s1284_s17 = smov (%p35_p0, %s33_s17), 0  ;;  %p56_p5 = scmp.eq.s32.totalorder %s719_s15, 0 }
   0xd   : > { %p1042_p4 = por %p50_p2, %p49_p1  ;;  %s37_s20 = ssub.s32 %s975_s13, %s1284_s17 }
   0xe   : > { %p107_p6 = scmp.eq.s32.totalorder %s719_s15, 1  ;;  %p40_p7 = scmp.eq.s32.totalorder %s37_s20, 0 }
   0xf   : > { %p1048_p8 = por %p56_p5, %p55_p3  ;;  %p113_p10 = scmp.eq.s32.totalorder %s720_s16, 1 }
  0x10   : > { %p1052_p9 = por %p107_p6, %p49_p1  ;;  %p722_p12 = scmp.ge.s32.totalorder %s979_s14, 2 }
  0x11   : > { %s1057_s23 = scalar_select %p40_p7, %s967_s11, %s42_s18  }
  0x12   : > { %p1059_p11 = por %p113_p10, %p55_p3  ;;  %p763_p13 = scmp.lt.s32.totalorder %s979_s14, 2 }
  0x13   : > { %s1066_s25 = sand.u32 1, %s967_s11   ;;  %s734_s27 = sshll.u32 %s975_s13, 4 }
  0x14   : > { %s723_s26 = sshll.u32 %s1066_s25, 4  ;;  %s144_s30 = scalar_lea.hbm %s1270_s0, %s734_s27 }
  0x15   : > { %s137_s3 = scalar_lea.vmem [#allocation4], %s723_s26  ;;  %s145_s5 = sshll.u32 %s144_s30, 4  ;;  %s146_s5 = int_to_ptr.hbm [resolvable:$true] %s145_s5 }
  0x16   : > { %s147_s4 = sshll.u32 %s137_s3, 4  ;;  %p1075_p0 = pnand %p763_p13, %p1042_p4  ;;  %s148_s4 = int_to_ptr.vmem [resolvable:$true] %s147_s4 }
  0x17   : > { %p727_p1 = scmp.ge.s32.totalorder %s979_s14, 1  ;;  %s134_s7 = scalar_lea.sflag [#allocation5], %s1066_s25 }
  0x18   : > { %s981_s8 = smov 128   ;;  %s982_s15 = smov 8  }
  0x19   : > { %755 = dma.hbm_to_vmem [thread:$0]  (!%p1075_p0), %s146_s5, 256, %s148_s4, %s134_s7, %s981_s8, %s981_s8, %s982_s15  }
  0x1a   : > { %p179_p2 = scmp.lt.s32.totalorder %s979_s14, 3  ;;  %s735_s16 = smul.u32 48, %s1066_s25 }
  0x1b   : > { %s736_s18 = smul.u32 48, %s975_s13  ;;  %s158_s30 = scalar_lea.sflag [#allocation8], %s1066_s25 }
  0x1c   : > { %p180_p3 = pnand %p727_p1, %p179_p2  ;;  %s161_s27 = scalar_lea.vmem [#allocation7], %s735_s16 }
  0x1d   : > { %s168_s19 = scalar_lea.hbm %s1271_s1, %s736_s18  ;;  %s171_s28 = sshll.u32 %s161_s27, 4  ;;  %s172_s28 = int_to_ptr.vmem [resolvable:$true] %s171_s28 }
  0x1e   : > { %s169_s29 = sshll.u32 %s168_s19, 4  ;;  %183 = sbr.rel (%p180_p3) target bundleno = 416 (0x1a0), region = 28  ;;  %s170_s29 = int_to_ptr.hbm [resolvable:$true] %s169_s29 }
  0x1f   : > { %758 = dma.hbm_to_vmem [thread:$0]  (!%p1075_p0), %s170_s29, 768, %s172_s28, %s158_s30, %s981_s8, %s981_s8, %s982_s15  }
  0x20   : > { %s1093_s3 = sand.u32 (!%p180_p3), 1, %s963_s10  }
  0x21   : > { %s728_s4 = sshll.u32 (!%p180_p3), %s1093_s3, 4  ;;  %s186_s5 = scalar_lea.sflag (!%p180_p3), [#allocation5], %s1093_s3 }
  0x22   : > { %s1097_s7 = scalar_lea.vmem (!%p180_p3), [#allocation4], %s728_s4 }
  0x23   : > { %946 = dma.done.wait (%p1048_p8), %s186_s5, 256  }
  0x24   : > { %948 = vsyncadd (%p1048_p8), %s186_s5, 4294967040  ;;  %s737_s25 = smul.u32 48, %s1093_s3  ;;  %s196_s6 = scalar_lea.sflag [#allocation8], %s1093_s3 }
  0x26   : > { %s199_s8 = scalar_lea.vmem [#allocation7], %s737_s25 }
  0x27   : > { %950 = dma.done.wait (%p1048_p8), %s196_s6, 768  }
  0x28   : > { %952 = vsyncadd (%p1048_p8), %s196_s6, 4294966528  ;;  %v1109_v0 = vld [vmem:[%s199_s8] sm:$0xff]  ;;  %v1111_v1 = vld [vmem:[%s199_s8 + $0x10] sm:$0xff]  ;;  %s983_s15 = smov 15   ;;  %s984_s16 = smov 127   ;;  %vm259_vm0 = vcmask 1046528  }
  0x29   : > { %v1113_v2 = vld [vmem:[%s199_s8 + $0x8] sm:$0xff]  ;;  %244 = vrot.lane.b32.xlu1 %v1109_v0, %s983_s15  ;;  %238 = vrot.lane.b32.xlu0 %v1109_v0, %s984_s16  ;;  %v1119_v3 = vld [vmem:[%s199_s8 + $0x18] sm:$0xff]  ;;  %s985_s21 = smov 113   ;;  %v260_v16 = vrot.slane %v1109_v0, 1  ;;  %v312_v18 = vrot.slane %v1111_v1, 1  ;;  %vm250_vm1 = vcmask 121856  }
  0x2a   : > { %292 = vrot.lane.b32.xlu2 %v1111_v1, %s984_s16  ;;  %v1126_v4 = vld [vmem:[%s1097_s7 + $0x8] sm:$0xff]  ;;  %v1138_v6 = vld [vmem:[%s199_s8 + $0x20] sm:$0xff]  ;;  %v261_v17 = vrot.slane %v1113_v2, 1  ;;  %v313_v19 = vrot.slane %v1119_v3, 1  ;;  %vm437_vm2 = vcmask 130048   ;;  %vm491_vm3 = vcmask 7168  }
  0x2b   : > { %v1136_v5 = vld [vmem:[%s199_s8 + $0x28] sm:$0xff]  ;;  %v1149_v7 = vld [vmem:[%s1097_s7] sm:$0xff]  ;;  %v364_v28 = vrot.slane %v1138_v6, 1  ;;  %v453_v54 = vrot.slane %v1126_v4, 1  ;;  %vm511_vm4 = vcmask 122880   ;;  %s729_s19 = sshll.u32 %s1093_s3, 3 }
  0x2c   : > { %v262_v20 = vsel %vm259_vm0, %v260_v16, %v261_v17  ;;  %v266_v21 = vsel %vm259_vm0, %v261_v17, %v260_v16  ;;  %v314_v22 = vsel %vm259_vm0, %v312_v18, %v313_v19  ;;  %v318_v25 = vsel %vm259_vm0, %v313_v19, %v312_v18  ;;  %s731_s27 = sshll.u32 %s971_s12, 3  ;;  %s225_s5 = scalar_lea.vmem [#allocation9], %s729_s19 }
  0x2d   : > { %v267_v23 = vsub.f32 %v1109_v0, %v262_v20  ;;  %v268_v24 = vsub.f32 %v1113_v2, %v266_v21  ;;  %v319_v26 = vsub.f32 %v1111_v1, %v314_v22  ;;  %v320_v27 = vsub.f32 %v1119_v3, %v318_v25  ;;  %s607_s4 = scalar_lea.hbm %s1272_s2, %s731_s27  ;;  %s609_s7 = sshll.u32 %s225_s5, 4  ;;  %s610_s7 = int_to_ptr.vmem [resolvable:$true] %s609_s7 }
  0x2e   : > { %v365_v29 = vrot.slane %v1136_v5, 1  ;;  %v452_v51 = vrot.slane %v1149_v7, 1  ;;  %v337_v19 = vrot.slane %v1119_v3, 7  ;;  %s611_s25 = sshll.u32 %s607_s4, 4  ;;  %s597_s12 = scalar_lea.sflag [#allocation6], %s1093_s3  ;;  %s612_s25 = int_to_ptr.hbm [resolvable:$true] %s611_s25 }
  0x2f   : > { %v269_v30 = vand.u32 2147483647, %v267_v23  ;;  %v270_v31 = vand.u32 2147483647, %v268_v24  ;;  %v321_v32 = vand.u32 2147483647, %v319_v26 }
  0x30   : > { %v322_v33 = vand.u32 2147483647, %v320_v27  ;;  %v366_v34 = vsel %vm259_vm0, %v364_v28, %v365_v29  ;;  %v370_v35 = vsel %vm259_vm0, %v365_v29, %v364_v28  ;;  %v454_v57 = vsel %vm259_vm0, %v452_v51, %v453_v54  ;;  %s907_s6 = sshra.s32 %s612_s25, 4  ;;  %s908_s6 = int_to_ptr.hbm [resolvable:$true] %s907_s6 }
  0x31   : > { %246 = vrot.lane.b32.xlu1 %v1113_v2, %s983_s15  ;;  %240 = vrot.lane.b32.xlu0 %v1113_v2, %s984_s16  ;;  %v371_v36 = vsub.f32 %v1138_v6, %v366_v34  ;;  %v372_v37 = vsub.f32 %v1136_v5, %v370_v35  ;;  %v323_v40 = vadd.f32 %v321_v32, %v269_v30  ;;  %v389_v34 = vrot.slane %v1136_v5, 7  ;;  %s909_s8 = scalar_lea.hbm %s908_s6, 8  ;;  %p914_p7 = scmp.lt.s32.totalorder %s908_s6, %s1272_s2 }
  0x32   : > { %294 = vrot.lane.b32.xlu2 %v1119_v3, %s984_s16  ;;  %v324_v41 = vadd.f32 %v322_v33, %v270_v31  ;;  %v458_v58 = vsel %vm259_vm0, %v453_v54, %v452_v51  ;;  %v459_v60 = vsub.f32 %v1149_v7, %v454_v57  ;;  %v339_v32 = vsub.f32 %v1111_v1, %v337_v19  ;;  %p910_p4 = scmp.ne.s32.totalorder %s908_s6, %s909_s8 }
  0x33   : > { %v373_v43 = vand.u32 2147483647, %v371_v36  ;;  %v374_v44 = vand.u32 2147483647, %v372_v37  ;;  %v460_v61 = vsub.f32 %v1126_v4, %v458_v58 }
  0x34   : > { %v461_v17 = vand.u32 2147483647, %v459_v60  ;;  %p911_p5 = pnand %p910_p4, %p1052_p9 }
  0x35   : > { %v375_v45 = vadd.f32 %v373_v43, %v323_v40  ;;  %v376_v46 = vadd.f32 %v374_v44, %v324_v41  ;;  %v462_v18 = vand.u32 2147483647, %v460_v61 }
  0x36   : > { %p912_p6 = pneg %p911_p5 }
  0x37   : > { %v400_v47 = vmul.f32 -0.33333334, %v375_v45  ;;  %v401_v48 = vmul.f32 -0.33333334, %v376_v46  ;;  %v340_v46 = vand.u32 2147483647, %v339_v32 }
  0x39   : > { %300 = vrot.lane.b32.xlu1 %v1119_v3, %s983_s15  ;;  %298 = vrot.lane.b32.xlu0 %v1111_v1, %s983_s15  ;;  %v402_v49 = vmul.f32 1.442695, %v400_v47  ;;  %v404_v50 = vmul.f32 1.442695, %v401_v48  ;;  %v391_v47 = vsub.f32 %v1138_v6, %v389_v34 }
  0x3a   : > { %273 = vrot.lane.b32.xlu2 %v1109_v0, %s985_s21 }
  0x3b   : > { %819 = vpow2.f32 %v402_v49 }
  0x3c   : > { %821 = vpow2.f32 %v404_v50 }
  0x41   : > { %325 = vrot.lane.b32.xlu1 %v1111_v1, %s985_s21  ;;  %275 = vrot.lane.b32.xlu0 %v1113_v2, %s985_s21  ;;  %v820_v22 = vpop.eup %819 }
  0x42   : > { %327 = vrot.lane.b32.xlu2 %v1119_v3, %s985_s21  ;;  %v463_v28 = vmul.f32 %v820_v22, %v461_v17 }
  0x49   : > { %346 = vrot.lane.b32.xlu1 %v1136_v5, %s984_s16  ;;  %344 = vrot.lane.b32.xlu0 %v1138_v6, %s984_s16 }
  0x4a   : > { %350 = vrot.lane.b32.xlu2 %v1138_v6, %s983_s15 }
  0x51   : > { %377 = vrot.lane.b32.xlu1 %v1138_v6, %s985_s21  ;;  %352 = vrot.lane.b32.xlu0 %v1136_v5, %s983_s15 }
  0x52   : > { %379 = vrot.lane.b32.xlu2 %v1136_v5, %s985_s21 }
  0x59   : > { %419 = vrot.lane.b32.xlu1 %v1126_v4, %s984_s16  ;;  %417 = vrot.lane.b32.xlu0 %v1149_v7, %s984_s16 }
  0x5a   : > { %423 = vrot.lane.b32.xlu2 %v1149_v7, %s983_s15 }
  0x61   : > { %479 = vrot.lane.b32.xlu1 %v1149_v7, %s985_s21  ;;  %425 = vrot.lane.b32.xlu0 %v1126_v4, %s983_s15 }
  0x62   : > { %481 = vrot.lane.b32.xlu2 %v1126_v4, %s985_s21  ;;  %s913_s21 = scalar_lea.hbm %s1272_s2, 16 }
  0x63   : > { %p915_p8 = scmp.lt.s32.totalorder %s913_s21, %s909_s8 }
  0x65   : > { %p916_p10 = por %p915_p8, %p914_p7 }
  0x67   : > { %p917_p13 = pnand %p916_p10, %p912_p6 }
  0x84   : > { %v293_v8 = vpop.permute.xlu2 %292 }
  0x8c   : > { %v1159_v9 = vpop.permute.xlu2 %294 }
  0x94   : > { %v1161_v10 = vpop.permute.xlu2 %273 }
  0x9b   : > { %v245_v11 = vpop.permute.xlu1 %244  ;;  %v239_v12 = vpop.permute.xlu0 %238 }
  0x9c   : > { %v328_v13 = vpop.permute.xlu2 %327  ;;  %v251_v62 = vsel %vm250_vm1, %v239_v12, %v245_v11 }
  0x9d   : > { %v332_v55 = vsub.f32 %v1119_v3, %v328_v13  ;;  %v285_v13 = vrot.slane %v1113_v2, 7  ;;  %v253_v23 = vsub.f32 %v1109_v0, %v251_v62 }
  0x9f   : > { %v334_v20 = vand.u32 2147483647, %v332_v55  ;;  %v287_v29 = vsub.f32 %v1109_v0, %v285_v13 }
  0xa1   : > { %v288_v44 = vand.u32 2147483647, %v287_v29 }
  0xa3   : > { %v1163_v14 = vpop.permute.xlu1 %246  ;;  %v1165_v15 = vpop.permute.xlu0 %240  ;;  %v341_v55 = vadd.f32 %v340_v46, %v288_v44 }
  0xa4   : > { %v351_v42 = vpop.permute.xlu2 %350  ;;  %v252_v24 = vsel %vm250_vm1, %v1165_v15, %v1163_v14  ;;  %v465_v15 = vsel %vm437_vm2, %v463_v28, 0.0 }
  0xab   : > { %v301_v38 = vpop.permute.xlu1 %300  ;;  %v299_v39 = vpop.permute.xlu0 %298 }
  0xac   : > { %v380_v59 = vpop.permute.xlu2 %379  ;;  %v304_v63 = vsel %vm250_vm1, %v293_v8, %v299_v39  ;;  %v822_v8 = vpop.eup %821  ;;  %v305_v12 = vsel %vm250_vm1, %v1159_v9, %v301_v38  ;;  %v279_v9 = vsub.f32 %v1109_v0, %v1161_v10  ;;  %v255_v38 = vand.u32 2147483647, %v253_v23 }
  0xad   : > { %v384_v16 = vsub.f32 %v1136_v5, %v380_v59  ;;  %v306_v11 = vsub.f32 %v1111_v1, %v304_v63  ;;  %v464_v31 = vmul.f32 %v822_v8, %v462_v18  ;;  %v254_v39 = vsub.f32 %v1113_v2, %v252_v24 }
  0xae   : > { %v307_v40 = vsub.f32 %v1119_v3, %v305_v12  ;;  %v281_v48 = vand.u32 2147483647, %v279_v9 }
  0xaf   : > { %v386_v25 = vand.u32 2147483647, %v384_v16  ;;  %v308_v35 = vand.u32 2147483647, %v306_v11  ;;  %v466_v37 = vsel %vm437_vm2, %v464_v31, 0.0 }
  0xb0   : > { %v467_v41 = vadd.f32 %v466_v37, %v465_v15  ;;  %v256_v51 = vand.u32 2147483647, %v254_v39 }
  0xb1   : > { %v310_v0 = vadd.f32 %v308_v35, %v255_v38 }
  0xb2   : > { %468 = vadd.xlane.f32.xlu1 %v467_v41 }
  0xb3   : > { %v326_v52 = vpop.permute.xlu1 %325  ;;  %v276_v53 = vpop.permute.xlu0 %275 }
  0xb4   : > { %v280_v56 = vsub.f32 %v1113_v2, %v276_v53  ;;  %v331_v36 = vsub.f32 %v1111_v1, %v326_v52  ;;  %v309_v1 = vand.u32 2147483647, %v307_v40 }
  0xb6   : > { %v282_v21 = vand.u32 2147483647, %v280_v56  ;;  %v333_v10 = vand.u32 2147483647, %v331_v36  ;;  %v392_v56 = vand.u32 2147483647, %v391_v47  ;;  %v311_v59 = vadd.f32 %v309_v1, %v256_v51 }
  0xb8   : > { %v336_v33 = vadd.f32 %v334_v20, %v282_v21  ;;  %v335_v57 = vadd.f32 %v333_v10, %v281_v48  ;;  %v393_v13 = vadd.f32 %v392_v56, %v341_v55 }
  0xba   : > { %v388_v45 = vadd.f32 %v386_v25, %v336_v33  ;;  %v412_v23 = vmul.f32 -0.33333334, %v393_v13 }
  0xbb   : > { %v347_v26 = vpop.permute.xlu1 %346  ;;  %v345_v27 = vpop.permute.xlu0 %344 }
  0xbc   : > { %v356_v30 = vsel %vm250_vm1, %v345_v27, %v351_v42  ;;  %v424_v42 = vpop.permute.xlu2 %423  ;;  %v407_v53 = vmul.f32 -0.33333334, %v388_v45  ;;  %v413_v12 = vmul.f32 1.442695, %v412_v23 }
  0xbd   : > { %v358_v14 = vsub.f32 %v1138_v6, %v356_v30 }
  0xbe   : > { %v410_v63 = vmul.f32 1.442695, %v407_v53 }
  0xbf   : > { %v360_v43 = vand.u32 2147483647, %v358_v14 }
  0xc0   : > { %823 = vpow2.f32 %v410_v63 }
  0xc1   : > { %v362_v52 = vadd.f32 %v360_v43, %v310_v0 }
  0xc3   : > { %v378_v49 = vpop.permute.xlu1 %377  ;;  %v353_v50 = vpop.permute.xlu0 %352  ;;  %v394_v61 = vmul.f32 -0.33333334, %v362_v52 }
  0xc4   : > { %v383_v2 = vsub.f32 %v1138_v6, %v378_v49  ;;  %v357_v3 = vsel %vm250_vm1, %v347_v26, %v353_v50  ;;  %v482_v17 = vpop.permute.xlu2 %481  ;;  %v506_v26 = vrot.slane %v1126_v4, 7 }
  0xc5   : > { %v359_v54 = vsub.f32 %v1136_v5, %v357_v3  ;;  %v396_v21 = vmul.f32 1.442695, %v394_v61  ;;  %v486_v24 = vsub.f32 %v1126_v4, %v482_v17 }
  0xc6   : > { %v385_v58 = vand.u32 2147483647, %v383_v2  ;;  %v824_v27 = vpop.eup %823  ;;  %v508_v9 = vsub.f32 %v1149_v7, %v506_v26 }
  0xc7   : > { %v361_v60 = vand.u32 2147483647, %v359_v54  ;;  %825 = vpow2.f32 %v396_v21  ;;  %v488_v25 = vand.u32 2147483647, %v486_v24 }
  0xc8   : > { %v387_v62 = vadd.f32 %v385_v58, %v335_v57  ;;  %v509_v43 = vand.u32 2147483647, %v508_v9 }
  0xc9   : > { %v363_v16 = vadd.f32 %v361_v60, %v311_v59  ;;  %v490_v15 = vmul.f32 %v824_v27, %v488_v25 }
  0xca   : > { %v406_v18 = vmul.f32 -0.33333334, %v387_v62 }
  0xcb   : > { %v395_v19 = vmul.f32 -0.33333334, %v363_v16  ;;  %v420_v6 = vpop.permute.xlu1 %419  ;;  %v418_v20 = vpop.permute.xlu0 %417 }
  0xcc   : > { %v429_v22 = vsel %vm250_vm1, %v418_v20, %v424_v42  ;;  %v408_v5 = vmul.f32 1.442695, %v406_v18  ;;  %v493_v42 = vsel %vm491_vm3, %v490_v15, 0.0 }
  0xcd   : > { %v398_v11 = vmul.f32 1.442695, %v395_v19  ;;  %v431_v8 = vsub.f32 %v1149_v7, %v429_v22  ;;  %v826_v14 = vpop.eup %825  ;;  %v524_v22 = vlaneseq }
  0xce   : > { %827 = vpow2.f32 %v408_v5 }
  0xcf   : > { %829 = vpow2.f32 %v398_v11  ;;  %v433_v28 = vand.u32 2147483647, %v431_v8  ;;  %v525_v24 = vshrl.u32 %v524_v22, 7 }
  0xd0   : > { %831 = vpow2.f32 %v413_v12 }
  0xd1   : > { %v435_v37 = vmul.f32 %v826_v14, %v433_v28  ;;  %vm532_vm5 = vcmp.eq.s32.totalorder %v525_v24, 0  ;;  %vm534_vm6 = vcmp.eq.s32.totalorder %v525_v24, 1 }
  0xd3   : > { %v480_v29 = vpop.permute.xlu1 %479  ;;  %v426_v30 = vpop.permute.xlu0 %425 }
  0xd4   : > { %v485_v31 = vsub.f32 %v1149_v7, %v480_v29  ;;  %v430_v32 = vsel %vm250_vm1, %v420_v6, %v426_v30  ;;  %v828_v35 = vpop.eup %827 }
  0xd5   : > { %v432_v33 = vsub.f32 %v1126_v4, %v430_v32  ;;  %v830_v38 = vpop.eup %829  ;;  %v438_v4 = vsel %vm437_vm2, %v435_v37, 0.0 }
  0xd6   : > { %v487_v34 = vand.u32 2147483647, %v485_v31  ;;  %v832_v44 = vpop.eup %831 }
  0xd7   : > { %v434_v36 = vand.u32 2147483647, %v432_v33  ;;  %v510_v7 = vmul.f32 %v832_v44, %v509_v43 }
  0xd8   : > { %v489_v39 = vmul.f32 %v828_v35, %v487_v34 }
  0xd9   : > { %v436_v40 = vmul.f32 %v830_v38, %v434_v36  ;;  %v512_v0 = vsel %vm511_vm4, %v510_v7, 0.0 }
  0xda   : > { %v492_v41 = vsel %vm491_vm3, %v489_v39, 0.0 }
  0xdb   : > { %v494_v45 = vadd.f32 %v493_v42, %v492_v41  ;;  %v439_v46 = vsel %vm437_vm2, %v436_v40, 0.0 }
  0xdc   : > { %v440_v47 = vadd.f32 %v439_v46, %v438_v4 }
  0xdd   : > { %495 = vadd.xlane.f32.xlu2 %v494_v45 }
  0xde   : > { %441 = vadd.xlane.f32.xlu0 %v440_v47 }
  0xe5   : > { %513 = vadd.xlane.f32.xlu2 %v512_v0 }
 0x125   : > { %v469_v10 = vpop.xlane.xlu1 %468 }
 0x126   : > { %v470_v48 = vrot.slane %v469_v10, 4 }
 0x128   : > { %v471_v1 = vadd.f32 %v470_v48, %v469_v10 }
 0x12a   : > { %v472_v49 = vrot.slane %v471_v1, 2 }
 0x12c   : > { %v473_v53 = vadd.f32 %v472_v49, %v471_v1 }
 0x12e   : > { %v474_v57 = vrot.slane %v473_v53, 1 }
 0x130   : > { %v475_v13 = vadd.f32 %v474_v57, %v473_v53 }
 0x150   : > { %v496_v50 = vpop.xlane.xlu2 %495 }
 0x151   : > { %v497_v51 = vrot.slane %v496_v50, 4  ;;  %v442_v52 = vpop.xlane.xlu0 %441 }
 0x152   : > { %v443_v2 = vrot.slane %v442_v52, 4 }
 0x153   : > { %v498_v3 = vadd.f32 %v497_v51, %v496_v50 }
 0x154   : > { %v444_v54 = vadd.f32 %v443_v2, %v442_v52 }
 0x155   : > { %v499_v55 = vrot.slane %v498_v3, 2 }
 0x156   : > { %v445_v56 = vrot.slane %v444_v54, 2 }
 0x157   : > { %v500_v58 = vadd.f32 %v499_v55, %v498_v3 }
 0x158   : > { %v514_v59 = vpop.xlane.xlu2 %513  ;;  %v446_v60 = vadd.f32 %v445_v56, %v444_v54 }
 0x159   : > { %v515_v61 = vrot.slane %v514_v59, 4  ;;  %v501_v62 = vrot.slane %v500_v58, 1 }
 0x15a   : > { %v447_v63 = vrot.slane %v446_v60, 1 }
 0x15b   : > { %v516_v16 = vadd.f32 %v515_v61, %v514_v59  ;;  %v502_v18 = vadd.f32 %v501_v62, %v500_v58 }
 0x15c   : > { %v448_v17 = vadd.f32 %v447_v63, %v446_v60 }
 0x15d   : > { %v517_v19 = vrot.slane %v516_v16, 2 }
 0x15e   : > { %738 = vpush %v448_v17 }
 0x15f   : > { %v518_v6 = vadd.f32 %v517_v19, %v516_v16  ;;  %740 = vpush %v475_v13 }
 0x160   : > { %742 = vpush %v502_v18 }
 0x161   : > { %v519_v20 = vrot.slane %v518_v6, 1 }
 0x163   : > { %v520_v21 = vadd.f32 %v519_v20, %v518_v6 }
 0x165   : > { %744 = vpush %v520_v21 }
 0x18f   : > { %s739_s18 = spop %738 }
 0x190   : > { %s741_s20 = spop %740  ;;  %v450_v5 = vstv %s739_s18 }
 0x191   : > { %s743_s26 = spop %742  ;;  %v477_v8 = vstv %s741_s20 }
 0x192   : > { %v504_v23 = vstv %s743_s26 }
 0x193   : > { %v505_v11 = vsub.f32 %v450_v5, %v504_v23 }
 0x195   : > { %v533_v26 = vsel %vm532_vm5, %v505_v11, 0.0 }
 0x196   : > { %s745_s28 = spop %744 }
 0x197   : > { %v522_v12 = vstv %s745_s28 }
 0x198   : > { %v523_v25 = vsub.f32 %v477_v8, %v522_v12 }
 0x19a   : > { %v535_v27 = vsel %vm534_vm6, %v523_v25, 0.0 }
 0x19b   : > { %v536_v28 = vadd.f32 %v535_v27, %v533_v26 }
 0x19d   : > { %538 = vst [vmem:[%s225_s5] sm:$0xff] %v536_v28 }
 0x19e   : > { %920 = shalt.err (!%p917_p13)
}
 0x19f   : > { %750 = dma.vmem_to_hbm [thread:$0]  (%p1052_p9), %s610_s7, 128, %s612_s25, %s597_s12  }
 0x1a0 PF: > { %s623_s3 = sand.u32 1, %s959_s9   ;;  %p760_p0 = pnand %p722_p12, %p1059_p11 }
 0x1a1   : > { %s624_s26 = scalar_lea.sflag [#allocation6], %s623_s3 }
 0x1a2   : > { %p761_p1 = pneg %p760_p0 }
 0x1a4   : > { %954 = dma.done.wait (%p761_p1), %s624_s26, 128  }
 0x1a5   : > { %956 = vsyncadd (%p761_p1), %s624_s26, 4294967168  ;;  %s21_s14 = sadd.s32 1, %s979_s14   ;;  %s1278_s9 = smov %s963_s10 }
 0x1a6   : > { %p18_p2 = scmp.ge.s32.totalorder %s21_s14, 4   ;;  %s1279_s10 = smov %s967_s11 }
 0x1a7   : > { %s1280_s11 = smov %s1057_s23  ;;  %s1281_s12 = smov %s975_s13 }
 0x1a8   : > { %s1282_s13 = smov %s1284_s17  ;;  %20 = sbr.rel (!%p18_p2) target bundleno = 8 (0x8), region = 94 }
 0x1ad   :  { %630 = vsyncpa [#allocation5], 1 }
 0x1ae   :  { %632 = vsyncpa [#allocation5 + $0x1], 1 }
 0x1af   :  { %633 = vsyncpa [#allocation8], 1 }
 0x1b0   :  { %635 = vsyncpa [#allocation8 + $0x1], 1 }
 0x1b1   :  { %636 = vsyncpa [#allocation6], 1 }
 0x1b2   :  { %638 = vsyncpa [#allocation6 + $0x1], 1 }

</bundles_post_ra>
